<compile_context>
chip_gen: v7x
topology: tpu7x:2x2x1
jax: 0.10.0
libtpu: 0.0.40
codegen_flags: <defaults>
</compile_context>

<pallas_src>
import functools

import jax
import jax.numpy as jnp
from jax import lax
from jax.experimental import pallas as pl
from jax.experimental.pallas import tpu as pltpu

LANE = 128   # vreg lane width  (last dim)
SUB = 8      # vreg sublane width (second-to-last dim)


def _ru(x, m):
    return ((x + m - 1) // m) * m


def _pad2(a, rows, cols):
    return jnp.pad(a, ((0, rows - a.shape[0]), (0, cols - a.shape[1])))


def _vmem_budget_bytes():
    """Generation-aware VMEM budget (~75% of physical VMEM, conservative fallback)."""
    cap = 64 * 1024 * 1024  # safe fallback (works on v7x's 64 MiB per-TC VMEM)
    try:
        info = pltpu.get_tpu_info()
        cap = int(getattr(info, "vmem_capacity_bytes", cap))
    except Exception:
        pass
    return max(32 * 1024 * 1024, (cap * 3) // 4)


# ----------------------------- edge block -----------------------------------
def _edge_kernel(send_ref, recv_ref, edges_ref, nodes_ref,
                 we_e_ref, we_s_ref, we_r_ref, be_ref, out_ref,
                 *, e_valid, compute_dtype):
    cd = compute_dtype
    te = send_ref.shape[0]
    n_pad = nodes_ref.shape[0]

    # Gather sender/receiver node rows: one-hot built in VMEM from the index
    # column (never materialized in HBM), selection done on the MXU.
    col = lax.broadcasted_iota(jnp.int32, (te, n_pad), 1)
    oh_s = (send_ref[...] == col).astype(cd)   # padded edges (idx = -1) -> zero rows
    oh_r = (recv_ref[...] == col).astype(cd)
    nodes_c = nodes_ref[...]                   # already compute_dtype (wrapper cast)
    h_s = jnp.dot(oh_s, nodes_c, preferred_element_type=jnp.float32).astype(cd)
    h_r = jnp.dot(oh_r, nodes_c, preferred_element_type=jnp.float32).astype(cd)

    # Three accumulating matmuls (no in-kernel concatenate copy).
    acc = jnp.dot(edges_ref[...], we_e_ref[...], preferred_element_type=jnp.float32)
    acc = acc + jnp.dot(h_s, we_s_ref[...], preferred_element_type=jnp.float32)
    acc = acc + jnp.dot(h_r, we_r_ref[...], preferred_element_type=jnp.float32)

    out = jnp.maximum(acc + be_ref[...], 0.0)  # bias already folds u @ We_u
    if e_valid is not None:                    # zero padded edge rows (static bound)
        rows = lax.broadcasted_iota(jnp.int32, out.shape, 0) + pl.program_id(0) * te
        out = jnp.where(rows < e_valid, out, 0.0)
    out_ref[...] = out.astype(out_ref.dtype)


def edge_block(edges_cd, nodes_cd, send_col, recv_col,
               we_e, we_s, we_r, be_eff, *, te, e_total, vmem_limit, compute_dtype):
    e_pad, de_p = edges_cd.shape
    n_pad, dn_p = nodes_cd.shape
    deo_p = be_eff.shape[-1]
    assert e_pad % te == 0
    grid = (e_pad // te,)
    e_valid = None if e_total == e_pad else e_total
    cds = jnp.dtype(compute_dtype).itemsize

    flops = int(4 * e_pad * n_pad * dn_p + 2 * e_pad * (de_p + 2 * dn_p) * deo_p)
    bytes_acc = int(cds * (e_pad * de_p + n_pad * dn_p + (de_p + 2 * dn_p) * deo_p)
                    + 4 * e_pad * deo_p + 8 * e_pad)

    return pl.pallas_call(
        functools.partial(_edge_kernel, e_valid=e_valid, compute_dtype=compute_dtype),
        out_shape=jax.ShapeDtypeStruct((e_pad, deo_p), jnp.float32),
        grid_spec=pltpu.PrefetchScalarGridSpec(
            num_scalar_prefetch=0,
            grid=grid,
            in_specs=[
                pl.BlockSpec((te, 1), lambda e: (e, 0)),         # sender indices
                pl.BlockSpec((te, 1), lambda e: (e, 0)),         # receiver indices
                pl.BlockSpec((te, de_p), lambda e: (e, 0)),      # edge features
                pl.BlockSpec((n_pad, dn_p), lambda e: (0, 0)),   # nodes (resident)
                pl.BlockSpec((de_p, deo_p), lambda e: (0, 0)),   # We_e
                pl.BlockSpec((dn_p, deo_p), lambda e: (0, 0)),   # We_s
                pl.BlockSpec((dn_p, deo_p), lambda e: (0, 0)),   # We_r
                pl.BlockSpec((1, deo_p), lambda e: (0, 0)),      # be_eff
            ],
            out_specs=pl.BlockSpec((te, deo_p), lambda e: (e, 0)),
        ),
        compiler_params=pltpu.CompilerParams(
            dimension_semantics=("parallel",),
            vmem_limit_bytes=vmem_limit),
        cost_estimate=pl.CostEstimate(flops=flops, transcendentals=0,
                                      bytes_accessed=bytes_acc),
    )(send_col, recv_col, edges_cd, nodes_cd, we_e, we_s, we_r, be_eff)


# ------------------------------ node block -----------------------------------
def _node_kernel(send_ref, recv_ref, nodes_ref, edges_ref,
                 wn_v_ref, wn_in_ref, wn_out_ref, bn_ref, out_ref,
                 agg_in, agg_out, *, n_valid, compute_dtype):
    cd = compute_dtype
    i = pl.program_id(0)                 # node-tile axis ("parallel")
    k = pl.program_id(1)                 # edge-tile reduction axis (trailing)
    nk = pl.num_programs(1)
    tn = nodes_ref.shape[0]
    te = edges_ref.shape[0]

    @pl.when(k == 0)
    def _():
        agg_in[...] = jnp.zeros_like(agg_in)
        agg_out[...] = jnp.zeros_like(agg_out)

    # Segment-sum (scatter-add) of edge features into this node tile: one-hot
    # built ALREADY TRANSPOSED (tn, te) from lane-dense (1, te) index rows, so
    # the MXU runs its native A@B cadence (no axis-0 contraction).
    row_ids = lax.broadcasted_iota(jnp.int32, (tn, te), 0) + i * tn
    oh_in_t = (recv_ref[...] == row_ids).astype(cd)
    oh_out_t = (send_ref[...] == row_ids).astype(cd)
    e_c = edges_ref[...]                 # already compute_dtype (wrapper cast)
    agg_in[...] += jnp.dot(oh_in_t, e_c, preferred_element_type=jnp.float32)
    agg_out[...] += jnp.dot(oh_out_t, e_c, preferred_element_type=jnp.float32)

    # Finalize this node tile once all edge tiles have been accumulated.
    @pl.when(k == nk - 1)
    def _():
        acc = jnp.dot(nodes_ref[...], wn_v_ref[...],
                      preferred_element_type=jnp.float32)
        acc = acc + jnp.dot(agg_in[...].astype(cd), wn_in_ref[...],
                            preferred_element_type=jnp.float32)
        acc = acc + jnp.dot(agg_out[...].astype(cd), wn_out_ref[...],
                            preferred_element_type=jnp.float32)
        out = jnp.maximum(acc + bn_ref[...], 0.0)   # bias already folds u @ Wn_u
        if n_valid is not None:                      # zero padded node rows
            rows = lax.broadcasted_iota(jnp.int32, out.shape, 0) + i * tn
            out = jnp.where(rows < n_valid, out, 0.0)
        out_ref[...] = out.astype(out_ref.dtype)


def node_block(nodes_cd, edges_cd, send_row, recv_row,
               wn_v, wn_in, wn_out, bn_eff,
               *, tn, te, n_total, vmem_limit, compute_dtype):
    n_pad, dn_p = nodes_cd.shape
    e_pad, deo_p = edges_cd.shape
    dno_p = bn_eff.shape[-1]
    assert n_pad % tn == 0 and e_pad % te == 0
    assert te == e_pad or te % LANE == 0   # lane-dense (1, te) index blocks
    grid = (n_pad // tn, e_pad // te)
    n_valid = None if n_total == n_pad else n_total
    cds = jnp.dtype(compute_dtype).itemsize

    # When te == e_pad the edge index_map is constant -> edges fetched once
    # (resident-edges fast path); otherwise each node tile re-streams them.
    edge_reads = e_pad if grid[1] == 1 else grid[0] * e_pad
    flops = int(4 * n_pad * e_pad * deo_p + 2 * n_pad * (dn_p + 2 * deo_p) * dno_p)
    bytes_acc = int(cds * (edge_reads * deo_p + n_pad * dn_p
                           + (dn_p + 2 * deo_p) * dno_p)
                    + 4 * n_pad * dno_p + 8 * e_pad)

    return pl.pallas_call(
        functools.partial(_node_kernel, n_valid=n_valid, compute_dtype=compute_dtype),
        out_shape=jax.ShapeDtypeStruct((n_pad, dno_p), jnp.float32),
        grid_spec=pltpu.PrefetchScalarGridSpec(
            num_scalar_prefetch=0,
            grid=grid,
            in_specs=[
                pl.BlockSpec((1, te), lambda i, k: (0, k)),        # senders (lane-dense)
                pl.BlockSpec((1, te), lambda i, k: (0, k)),        # receivers (lane-dense)
                pl.BlockSpec((tn, dn_p), lambda i, k: (i, 0)),     # node features
                pl.BlockSpec((te, deo_p), lambda i, k: (k, 0)),    # updated edges
                pl.BlockSpec((dn_p, dno_p), lambda i, k: (0, 0)),  # Wn_v
                pl.BlockSpec((deo_p, dno_p), lambda i, k: (0, 0)), # Wn_in
                pl.BlockSpec((deo_p, dno_p), lambda i, k: (0, 0)), # Wn_out
                pl.BlockSpec((1, dno_p), lambda i, k: (0, 0)),     # bn_eff
            ],
            out_specs=pl.BlockSpec((tn, dno_p), lambda i, k: (i, 0)),
            scratch_shapes=[
                pltpu.VMEM((tn, deo_p), jnp.float32),   # agg_in  (f32 accumulate)
                pltpu.VMEM((tn, deo_p), jnp.float32),   # agg_out (f32 accumulate)
            ],
        ),
        compiler_params=pltpu.CompilerParams(
            dimension_semantics=("parallel", "arbitrary"),
            vmem_limit_bytes=vmem_limit),
        cost_estimate=pl.CostEstimate(flops=flops, transcendentals=0,
                                      bytes_accessed=bytes_acc),
    )(send_row, recv_row, nodes_cd, edges_cd, wn_v, wn_in, wn_out, bn_eff)


# ------------------------------ global block ---------------------------------
def _global_kernel(nodes_ref, edges_ref, u_ref,
                   wg_n_ref, wg_e_ref, wg_u_ref, bg_ref, out_ref):
    n_sum = jnp.sum(nodes_ref[...], axis=0, keepdims=True)
    e_sum = jnp.sum(edges_ref[...], axis=0, keepdims=True)
    acc = jnp.dot(n_sum, wg_n_ref[...], preferred_element_type=jnp.float32)
    acc = acc + jnp.dot(e_sum, wg_e_ref[...], preferred_element_type=jnp.float32)
    acc = acc + jnp.dot(u_ref[...], wg_u_ref[...], preferred_element_type=jnp.float32)
    out_ref[...] = jnp.maximum(acc + bg_ref[...], 0.0).astype(out_ref.dtype)


def global_block(nodes_p, edges_p, u_p, wg_n, wg_e, wg_u, bg_p, *, vmem_limit):
    # TODO(synk): tile the node/edge sums for graphs whose padded arrays exceed VMEM.
    dgo_p = bg_p.shape[-1]
    args = (nodes_p, edges_p, u_p, wg_n, wg_e, wg_u, bg_p)

    def full_spec(a):
        return pl.BlockSpec(a.shape, lambda _: (0,) * a.ndim)

    return pl.pallas_call(
        _global_kernel,
        out_shape=jax.ShapeDtypeStruct((1, dgo_p), jnp.float32),
        grid_spec=pltpu.PrefetchScalarGridSpec(
            num_scalar_prefetch=0,
            grid=(1,),
            in_specs=[full_spec(a) for a in args],
            out_specs=pl.BlockSpec((1, dgo_p), lambda _: (0, 0)),
        ),
        compiler_params=pltpu.CompilerParams(
            dimension_semantics=("arbitrary",),
            vmem_limit_bytes=vmem_limit),
    )(*args)


# ------------------------------ GNConv ---------------------------------------
def gn_conv(graph, params, use_edge_block=True, use_node_block=True,
            use_global_block=True, compute_dtype=jnp.bfloat16,
            tn=None, te=None):
    """Pallas GNConv forward. graph = dict(nodes, edges, senders, receivers, u)."""
    nodes = graph["nodes"].astype(jnp.float32)
    edges = graph["edges"].astype(jnp.float32)
    u = graph["u"].astype(jnp.float32)
    senders = graph["senders"].astype(jnp.int32)
    receivers = graph["receivers"].astype(jnp.int32)
    cd = compute_dtype

    N, Dn = nodes.shape
    E, De = edges.shape
    Dg = u.shape[-1]

    # Generation-aware VMEM budget and tile caps.
    budget = _vmem_budget_bytes()
    big_vmem = budget >= 80 * 1024 * 1024          # 128 MiB chips (v5e/v6e)
    cap = 1024 if big_vmem else 512                # <=512 on 64 MiB chips (v7x)

    if te is None:
        te = min(_ru(E, SUB), cap)
    te = max(SUB, _ru(te, SUB))
    if _ru(E, te) > te:        # multi-tile along E -> lane-dense (1, te) blocks need 128|te
        te = _ru(te, LANE)
    e_pad = _ru(E, te)

    if tn is None:
        tn = min(_ru(N, SUB), cap)
    tn = max(SUB, _ru(tn, SUB))
    n_pad = _ru(N, tn)

    # Lane-dense feature padding (multiples of 128).
    dn_p, de_p, dg_p = _ru(Dn, LANE), _ru(De, LANE), _ru(Dg, LANE)

    nodes_p = _pad2(nodes, n_pad, dn_p)            # f32 (global block / fallback)
    nodes_cd = nodes_p.astype(cd)                  # cast ONCE for MXU operands
    edges_p = _pad2(edges, e_pad, de_p)
    u_p = _pad2(u, 1, dg_p)

    send_col = jnp.pad(senders, (0, e_pad - E), constant_values=-1).reshape(e_pad, 1)
    recv_col = jnp.pad(receivers, (0, e_pad - E), constant_values=-1).reshape(e_pad, 1)
    send_row = send_col.reshape(1, e_pad)          # lane-dense copies for the scatter
    recv_row = recv_col.reshape(1, e_pad)

    new_nodes, new_edges, new_u = nodes, edges, u
    edges_cur_p = edges_p                          # f32 view of current edges
    de_cur_p = de_p

    if use_edge_block:
        Deo = params["be"].shape[-1]
        deo_p = _ru(Deo, LANE)
        we_e = _pad2(params["we_e"], de_p, deo_p).astype(cd)
        we_s = _pad2(params["we_s"], dn_p, deo_p).astype(cd)
        we_r = _pad2(params["we_r"], dn_p, deo_p).astype(cd)
        be_eff = _pad2(params["be"] + u @ params["we_u"], 1, deo_p)  # fold u-term
        edges_cur_p = edge_block(edges_p.astype(cd), nodes_cd, send_col, recv_col,
                                 we_e, we_s, we_r, be_eff,
                                 te=te, e_total=E, vmem_limit=budget,
                                 compute_dtype=cd)
        de_cur_p = deo_p
        new_edges = edges_cur_p[:E, :Deo]

    nodes_for_global, dn_glob_p = nodes_p, dn_p
    if use_node_block:
        Dno = params["bn"].shape[-1]
        dno_p = _ru(Dno, LANE)
        wn_v = _pad2(params["wn_v"], dn_p, dno_p).astype(cd)
        wn_in = _pad2(params["wn_in"], de_cur_p, dno_p).astype(cd)
        wn_out = _pad2(params["wn_out"], de_cur_p, dno_p).astype(cd)
        bn_eff = _pad2(params["bn"] + u @ params["wn_u"], 1, dno_p)  # fold u-term
        nodes_new_p = node_block(nodes_cd, edges_cur_p.astype(cd), send_row, recv_row,
                                 wn_v, wn_in, wn_out, bn_eff,
                                 tn=tn, te=te, n_total=N, vmem_limit=budget,
                                 compute_dtype=cd)
        new_nodes = nodes_new_p[:N, :Dno]
        nodes_for_global, dn_glob_p = nodes_new_p, dno_p

    if use_global_block:
        Dgo = params["bg"].shape[-1]
        dgo_p = _ru(Dgo, LANE)
        wg_n = _pad2(params["wg_n"], dn_glob_p, dgo_p)
        wg_e = _pad2(params["wg_e"], de_cur_p, dgo_p)
        wg_u = _pad2(params["wg_u"], dg_p, dgo_p)
        bg_p = _pad2(params["bg"], 1, dgo_p)
        u_new_p = global_block(nodes_for_global, edges_cur_p, u_p,
                               wg_n, wg_e, wg_u, bg_p, vmem_limit=budget)
        new_u = u_new_p[:, :Dgo]

    return {"nodes": new_nodes, "edges": new_edges, "u": new_u,
            "senders": senders, "receivers": receivers}


# ------------------------- pure-JAX reference ---------------------------------
def gn_conv_ref(graph, params):
    nodes, edges, u = graph["nodes"], graph["edges"], graph["u"]
    senders, receivers = graph["senders"], graph["receivers"]
    N = nodes.shape[0]
    S = jax.nn.one_hot(senders, N, dtype=jnp.float32)
    R = jax.nn.one_hot(receivers, N, dtype=jnp.float32)

    h_s, h_r = S @ nodes, R @ nodes
    edges_n = jax.nn.relu(edges @ params["we_e"] + h_s @ params["we_s"]
                          + h_r @ params["we_r"] + u @ params["we_u"] + params["be"])
    agg_in, agg_out = R.T @ edges_n, S.T @ edges_n
    nodes_n = jax.nn.relu(nodes @ params["wn_v"] + agg_in @ params["wn_in"]
                          + agg_out @ params["wn_out"] + u @ params["wn_u"] + params["bn"])
    u_n = jax.nn.relu(jnp.sum(nodes_n, 0, keepdims=True) @ params["wg_n"]
                      + jnp.sum(edges_n, 0, keepdims=True) @ params["wg_e"]
                      + u @ params["wg_u"] + params["bg"])
    return {"nodes": nodes_n, "edges": edges_n, "u": u_n}


# --------------------------------- test ---------------------------------------
if __name__ == "__main__":
    def make_graph_and_params(seed, N, E, Dn, De, Dg, Deo, Dno, Dgo):
        ks = jax.random.split(jax.random.PRNGKey(seed), 20)
        nodes = jax.random.normal(ks[0], (N, Dn), jnp.float32)
        edges = jax.random.normal(ks[1], (E, De), jnp.float32)
        u = jax.random.normal(ks[2], (1, Dg), jnp.float32)
        senders = jax.random.randint(ks[3], (E,), 0, N)
        receivers = jax.random.randint(ks[4], (E,), 0, N)
        s = 0.1
        params = {
            "we_e": s * jax.random.normal(ks[5], (De, Deo), jnp.float32),
            "we_s": s * jax.random.normal(ks[6], (Dn, Deo), jnp.float32),
            "we_r": s * jax.random.normal(ks[7], (Dn, Deo), jnp.float32),
            "we_u": s * jax.random.normal(ks[8], (Dg, Deo), jnp.float32),
            "be":   s * jax.random.normal(ks[9], (1, Deo), jnp.float32),
            "wn_v":   s * jax.random.normal(ks[10], (Dn, Dno), jnp.float32),
            "wn_in":  s * jax.random.normal(ks[11], (Deo, Dno), jnp.float32),
            "wn_out": s * jax.random.normal(ks[12], (Deo, Dno), jnp.float32),
            "wn_u":   s * jax.random.normal(ks[13], (Dg, Dno), jnp.float32),
            "bn":     s * jax.random.normal(ks[14], (1, Dno), jnp.float32),
            "wg_n": s * jax.random.normal(ks[15], (Dno, Dgo), jnp.float32),
            "wg_e": s * jax.random.normal(ks[16], (Deo, Dgo), jnp.float32),
            "wg_u": s * jax.random.normal(ks[17], (Dg, Dgo), jnp.float32),
            "bg":   s * jax.random.normal(ks[18], (1, Dgo), jnp.float32),
        }
        graph = {"nodes": nodes, "edges": edges, "u": u,
                 "senders": senders, "receivers": receivers}
        return graph, params

    def check(out, ref, atol, rtol, label):
        for k in ("edges", "nodes", "u"):
            err = float(jnp.max(jnp.abs(out[k] - ref[k])))
            assert jnp.allclose(out[k], ref[k], atol=atol, rtol=rtol), (
                f"{label}: mismatch in {k}: max abs err {err}")

    # Case 1: small graph (single tile per grid axis), f32 and bf16 compute.
    graph, params = make_graph_and_params(0, N=8, E=16, Dn=8, De=8, Dg=8,
                                          Deo=16, Dno=16, Dgo=16)
    ref = gn_conv_ref(graph, params)
    out = gn_conv(graph, params, compute_dtype=jnp.float32)
    jax.block_until_ready(out["u"])
    check(out, ref, 1e-3, 1e-3, "small/f32")
    out = gn_conv(graph, params, compute_dtype=jnp.bfloat16)
    jax.block_until_ready(out["u"])
    check(out, ref, 5e-2, 5e-2, "small/bf16")

    # Case 2: larger graph with auto tiling (resident-edges fast path on most chips).
    graph, params = make_graph_and_params(1, N=300, E=700, Dn=12, De=20, Dg=8,
                                          Deo=24, Dno=40, Dgo=8)
    ref = gn_conv_ref(graph, params)
    out = gn_conv(graph, params, compute_dtype=jnp.float32)
    jax.block_until_ready(out["u"])
    check(out, ref, 1e-3, 1e-3, "large/f32/auto")

    # Case 3: same graph, forced small tiles -> multi-tile grid (3 node x 3 edge
    # tiles) exercising the cross-tile accumulators and streamed edge tiles.
    out = gn_conv(graph, params, compute_dtype=jnp.float32, tn=128, te=256)
    jax.block_until_ready(out["u"])
    check(out, ref, 1e-3, 1e-3, "large/f32/tiled")

    print("KERNEL_OK")
</pallas_src>

<mosaic_0001>
module attributes {stable_mosaic.version = 11 : i64} {
  func.func @_edge_kernel(%arg0: i32, %arg1: memref<16x1xi32, #tpu.memory_space<vmem>>, %arg2: memref<16x1xi32, #tpu.memory_space<vmem>>, %arg3: memref<16x128xf32, #tpu.memory_space<vmem>>, %arg4: memref<8x128xf32, #tpu.memory_space<vmem>>, %arg5: memref<128x128xf32, #tpu.memory_space<vmem>>, %arg6: memref<128x128xf32, #tpu.memory_space<vmem>>, %arg7: memref<128x128xf32, #tpu.memory_space<vmem>>, %arg8: memref<1x128xf32, #tpu.memory_space<vmem>>, %arg9: memref<16x128xf32, #tpu.memory_space<vmem>>) attributes {dimension_semantics = [#tpu.dimension_semantics<parallel>], iteration_bounds = array<i64: 1>, scalar_prefetch = 0 : i64, scratch_operands = 0 : i64, tpu.core_type = #tpu.core_type<tc>, window_params = [{transform_indices = @transform_0, window_bounds = array<i64: 16, 1>}, {transform_indices = @transform_1, window_bounds = array<i64: 16, 1>}, {transform_indices = @transform_2, window_bounds = array<i64: 16, 128>}, {pipeline_mode = #tpu.pipeline_mode<synchronous>, transform_indices = @transform_3, window_bounds = array<i64: 8, 128>}, {pipeline_mode = #tpu.pipeline_mode<synchronous>, transform_indices = @transform_4, window_bounds = array<i64: 128, 128>}, {pipeline_mode = #tpu.pipeline_mode<synchronous>, transform_indices = @transform_5, window_bounds = array<i64: 128, 128>}, {pipeline_mode = #tpu.pipeline_mode<synchronous>, transform_indices = @transform_6, window_bounds = array<i64: 128, 128>}, {pipeline_mode = #tpu.pipeline_mode<synchronous>, transform_indices = @transform_7, window_bounds = array<i64: 1, 128>}, {transform_indices = @transform_8, window_bounds = array<i64: 16, 128>}]} {
    %0 = tpu.iota {dimensions = array<i32: 1>} : vector<16x8xi32>
    %c0 = arith.constant 0 : index
    %c0_0 = arith.constant 0 : index
    %1 = vector.load %arg1[%c0, %c0_0] : memref<16x1xi32, #tpu.memory_space<vmem>>, vector<16x1xi32>
    %2 = vector.broadcast %1 : vector<16x1xi32> to vector<16x8xi32>
    %3 = arith.cmpi eq, %2, %0 : vector<16x8xi32>
    %4 = arith.extui %3 : vector<16x8xi1> to vector<16x8xi32>
    %5 = arith.sitofp %4 : vector<16x8xi32> to vector<16x8xf32>
    %c0_1 = arith.constant 0 : index
    %c0_2 = arith.constant 0 : index
    %6 = vector.load %arg2[%c0_1, %c0_2] : memref<16x1xi32, #tpu.memory_space<vmem>>, vector<16x1xi32>
    %7 = vector.broadcast %6 : vector<16x1xi32> to vector<16x8xi32>
    %8 = arith.cmpi eq, %7, %0 : vector<16x8xi32>
    %9 = arith.extui %8 : vector<16x8xi1> to vector<16x8xi32>
    %10 = arith.sitofp %9 : vector<16x8xi32> to vector<16x8xf32>
    %c0_3 = arith.constant 0 : index
    %c0_4 = arith.constant 0 : index
    %11 = vector.load %arg4[%c0_3, %c0_4] : memref<8x128xf32, #tpu.memory_space<vmem>>, vector<8x128xf32>
    %cst = arith.constant dense<0.000000e+00> : vector<16x128xf32>
    %12 = tpu.matmul %5, %11, %cst {dimension_numbers = #tpu.dot_dimension_numbers<[1], [0], [0], [1], [0, 0, 1, 1], [], []>} : vector<16x8xf32>, vector<8x128xf32>, vector<16x128xf32> -> vector<16x128xf32>
    %cst_5 = arith.constant dense<0.000000e+00> : vector<16x128xf32>
    %13 = tpu.matmul %10, %11, %cst_5 {dimension_numbers = #tpu.dot_dimension_numbers<[1], [0], [0], [1], [0, 0, 1, 1], [], []>} : vector<16x8xf32>, vector<8x128xf32>, vector<16x128xf32> -> vector<16x128xf32>
    %c0_6 = arith.constant 0 : index
    %c0_7 = arith.constant 0 : index
    %14 = vector.load %arg3[%c0_6, %c0_7] : memref<16x128xf32, #tpu.memory_space<vmem>>, vector<16x128xf32>
    %c0_8 = arith.constant 0 : index
    %c0_9 = arith.constant 0 : index
    %15 = vector.load %arg5[%c0_8, %c0_9] : memref<128x128xf32, #tpu.memory_space<vmem>>, vector<128x128xf32>
    %cst_10 = arith.constant dense<0.000000e+00> : vector<16x128xf32>
    %16 = tpu.matmul %14, %15, %cst_10 {dimension_numbers = #tpu.dot_dimension_numbers<[1], [0], [0], [1], [0, 0, 1, 1], [], []>} : vector<16x128xf32>, vector<128x128xf32>, vector<16x128xf32> -> vector<16x128xf32>
    %c0_11 = arith.constant 0 : index
    %c0_12 = arith.constant 0 : index
    %17 = vector.load %arg6[%c0_11, %c0_12] : memref<128x128xf32, #tpu.memory_space<vmem>>, vector<128x128xf32>
    %cst_13 = arith.constant dense<0.000000e+00> : vector<16x128xf32>
    %18 = tpu.matmul %12, %17, %cst_13 {dimension_numbers = #tpu.dot_dimension_numbers<[1], [0], [0], [1], [0, 0, 1, 1], [], []>} : vector<16x128xf32>, vector<128x128xf32>, vector<16x128xf32> -> vector<16x128xf32>
    %19 = arith.addf %16, %18 : vector<16x128xf32>
    %c0_14 = arith.constant 0 : index
    %c0_15 = arith.constant 0 : index
    %20 = vector.load %arg7[%c0_14, %c0_15] : memref<128x128xf32, #tpu.memory_space<vmem>>, vector<128x128xf32>
    %cst_16 = arith.constant dense<0.000000e+00> : vector<16x128xf32>
    %21 = tpu.matmul %13, %20, %cst_16 {dimension_numbers = #tpu.dot_dimension_numbers<[1], [0], [0], [1], [0, 0, 1, 1], [], []>} : vector<16x128xf32>, vector<128x128xf32>, vector<16x128xf32> -> vector<16x128xf32>
    %22 = arith.addf %19, %21 : vector<16x128xf32>
    %c0_17 = arith.constant 0 : index
    %c0_18 = arith.constant 0 : index
    %23 = vector.load %arg8[%c0_17, %c0_18] : memref<1x128xf32, #tpu.memory_space<vmem>>, vector<1x128xf32>
    %24 = vector.broadcast %23 : vector<1x128xf32> to vector<16x128xf32>
    %25 = arith.addf %22, %24 : vector<16x128xf32>
    %cst_19 = arith.constant 0.000000e+00 : f32
    %26 = vector.broadcast %cst_19 : f32 to vector<16x128xf32>
    %27 = arith.maximumf %25, %26 : vector<16x128xf32>
    %c0_20 = arith.constant 0 : index
    %c0_21 = arith.constant 0 : index
    %28 = vector.load %arg9[%c0_20, %c0_21] : memref<16x128xf32, #tpu.memory_space<vmem>>, vector<16x128xf32>
    tpu.vector_store %arg9[%c0_20, %c0_21], %27 {strides = array<i32>} : memref<16x128xf32, #tpu.memory_space<vmem>>, vector<16x128xf32>,
    return
  }
  func.func @transform_0(%arg0: i32) -> (i32, i32) {
    %c0_i32 = arith.constant 0 : i32
    %c0_i32_0 = arith.constant 0 : i32
    return %arg0, %c0_i32 : i32, i32
  }
  func.func @transform_1(%arg0: i32) -> (i32, i32) {
    %c0_i32 = arith.constant 0 : i32
    %c0_i32_0 = arith.constant 0 : i32
    return %arg0, %c0_i32 : i32, i32
  }
  func.func @transform_2(%arg0: i32) -> (i32, i32) {
    %c0_i32 = arith.constant 0 : i32
    %c0_i32_0 = arith.constant 0 : i32
    return %arg0, %c0_i32 : i32, i32
  }
  func.func @transform_3(%arg0: i32) -> (i32, i32) {
    %c0_i32 = arith.constant 0 : i32
    %c0_i32_0 = arith.constant 0 : i32
    %c0_i32_1 = arith.constant 0 : i32
    return %c0_i32, %c0_i32_0 : i32, i32
  }
  func.func @transform_4(%arg0: i32) -> (i32, i32) {
    %c0_i32 = arith.constant 0 : i32
    %c0_i32_0 = arith.constant 0 : i32
    %c0_i32_1 = arith.constant 0 : i32
    return %c0_i32, %c0_i32_0 : i32, i32
  }
  func.func @transform_5(%arg0: i32) -> (i32, i32) {
    %c0_i32 = arith.constant 0 : i32
    %c0_i32_0 = arith.constant 0 : i32
    %c0_i32_1 = arith.constant 0 : i32
    return %c0_i32, %c0_i32_0 : i32, i32
  }
  func.func @transform_6(%arg0: i32) -> (i32, i32) {
    %c0_i32 = arith.constant 0 : i32
    %c0_i32_0 = arith.constant 0 : i32
    %c0_i32_1 = arith.constant 0 : i32
    return %c0_i32, %c0_i32_0 : i32, i32
  }
  func.func @transform_7(%arg0: i32) -> (i32, i32) {
    %c0_i32 = arith.constant 0 : i32
    %c0_i32_0 = arith.constant 0 : i32
    %c0_i32_1 = arith.constant 0 : i32
    return %c0_i32, %c0_i32_0 : i32, i32
  }
  func.func @transform_8(%arg0: i32) -> (i32, i32) {
    %c0_i32 = arith.constant 0 : i32
    %c0_i32_0 = arith.constant 0 : i32
    return %arg0, %c0_i32 : i32, i32
  }
}

</mosaic_0001>

<bundles_post_ra>
// kernel: tpu_custom_call.1
= control target key start
LH: loop header
LB: loop body
LE: loop exit
PB: predicated region body
PF: predicated region fallthrough
CT: control target
= control target key end

     0   :  { %13 = vsyncpa [#allocation3], 0  ;;  %s1115_s0 = inlined_call_operand.vmem [shape: s32[16,1], index: 0, kind: input, shape index: {}]   ;;  %s1116_s1 = inlined_call_operand.vmem [shape: s32[16,1], index: 1, kind: input, shape index: {}]   ;;  %s1117_s2 = inlined_call_operand.vmem [shape: f32[16,128], index: 2, kind: input, shape index: {}]   ;;  %s1118_s3 = inlined_call_operand.vmem [shape: f32[8,128], index: 3, kind: input, shape index: {}]   ;;  %s1119_s4 = inlined_call_operand.hbm [shape: f32[128,128], index: 4, kind: input, shape index: {}]   ;;  %s1120_s5 = inlined_call_operand.hbm [shape: f32[128,128], index: 5, kind: input, shape index: {}]   ;;  %s1121_s6 = inlined_call_operand.hbm [shape: f32[128,128], index: 6, kind: input, shape index: {}]   ;;  %s1122_s7 = inlined_call_operand.vmem [shape: f32[1,128], index: 7, kind: input, shape index: {}]   ;;  %s1123_s8 = inlined_call_operand.hbm [shape: f32[16,128], index: 8, kind: output, shape index: {}]  }
   0x1   :  { %14 = vsyncpa [#allocation6], 0 }
   0x2   :  { %15 = vsyncpa [#allocation4], 0  ;;  %s961_s27 = smov [#allocation5]   ;;  %s962_s29 = smov [#allocation2]  }
   0x3   :  { %s41_s28 = sshll.u32 %s961_s27, 4  ;;  %s29_s30 = sshll.u32 %s962_s29, 4  ;;  %s42_s28 = int_to_ptr.vmem [resolvable:$true] %s41_s28  ;;  %s1014_s30 = int_to_ptr.vmem [resolvable:$true] %s29_s30 }
   0x4   :  { %s867_s11 = scalar_lea.hbm %s1120_s5, 2048 }
   0x5   :  { %p868_p0 = scmp.ne.s32.totalorder %s1120_s5, %s867_s11  ;;  %p871_p1 = scmp.lt.u32.totalorder %s867_s11, %s1120_s5 }
   0x7   :  { %p873_p2 = pnand %p871_p1, %p868_p0 }
   0x9   :  { %876 = shalt.err (!%p873_p2)
}
   0xa   :  { %s877_s16 = scalar_lea.vmem %s42_s28, 2048  ;;  %p882_p4 = scmp.lt.s32.totalorder %s42_s28, %s42_s28 }
   0xb   :  { %p878_p3 = scmp.ne.s32.totalorder %s42_s28, %s877_s16  ;;  %p883_p5 = scmp.lt.s32.totalorder %s877_s16, %s877_s16 }
   0xd   :  { %p884_p6 = por %p883_p5, %p882_p4 }
   0xf   :  { %p885_p7 = pnand %p884_p6, %p878_p3 }
  0x11   :  { %888 = shalt.err (!%p885_p7)
}
  0x12   :  { %s963_s17 = smov 128   ;;  %s964_s18 = smov 8  }
  0x13   :  { %47 = dma.hbm_to_vmem [thread:$0]  %s1120_s5, 2048, %s42_s28, [#allocation6], %s963_s17, %s963_s17, %s964_s18  }
  0x14   :  { %s889_s23 = scalar_lea.hbm %s1119_s4, 2048 }
  0x15   :  { %p890_p8 = scmp.ne.s32.totalorder %s1119_s4, %s889_s23  ;;  %p893_p9 = scmp.lt.u32.totalorder %s889_s23, %s1119_s4 }
  0x17   :  { %p895_p10 = pnand %p893_p9, %p890_p8 }
  0x19   :  { %898 = shalt.err (!%p895_p10)
}
  0x1a   :  { %s899_s29 = scalar_lea.vmem %s1014_s30, 2048  ;;  %p904_p12 = scmp.lt.s32.totalorder %s1014_s30, %s1014_s30 }
  0x1b   :  { %p900_p11 = scmp.ne.s32.totalorder %s1014_s30, %s899_s29  ;;  %p905_p13 = scmp.lt.s32.totalorder %s899_s29, %s899_s29 }
  0x1d   :  { %p906_p0 = por %p905_p13, %p904_p12 }
  0x1f   :  { %p907_p1 = pnand %p906_p0, %p900_p11 }
  0x21   :  { %910 = shalt.err (!%p907_p1)
}
  0x22   :  { %35 = dma.hbm_to_vmem [thread:$0]  %s1119_s4, 2048, %s1014_s30, [#allocation3], %s963_s17, %s963_s17, %s964_s18  }
  0x23   :  { %s965_s9 = smov [#allocation7]   ;;  %s911_s13 = scalar_lea.hbm %s1121_s6, 2048 }
  0x24   :  { %s53_s10 = sshll.u32 %s965_s9, 4  ;;  %p912_p2 = scmp.ne.s32.totalorder %s1121_s6, %s911_s13  ;;  %s54_s10 = int_to_ptr.vmem [resolvable:$true] %s53_s10 }
  0x25   :  { %p915_p3 = scmp.lt.u32.totalorder %s911_s13, %s1121_s6 }
  0x27   :  { %p917_p4 = pnand %p915_p3, %p912_p2 }
  0x29   :  { %920 = shalt.err (!%p917_p4)
}
  0x2a   :  { %s921_s20 = scalar_lea.vmem %s54_s10, 2048  ;;  %p926_p6 = scmp.lt.s32.totalorder %s54_s10, %s54_s10 }
  0x2b   :  { %p922_p5 = scmp.ne.s32.totalorder %s54_s10, %s921_s20  ;;  %p927_p7 = scmp.lt.s32.totalorder %s921_s20, %s921_s20 }
  0x2d   :  { %p928_p8 = por %p927_p7, %p926_p6 }
  0x2f   :  { %p929_p9 = pnand %p928_p8, %p922_p5 }
  0x31   :  { %932 = shalt.err (!%p929_p9)
}
  0x32   :  { %59 = dma.hbm_to_vmem [thread:$0]  %s1121_s6, 2048, %s54_s10, [#allocation6], %s963_s17, %s963_s17, %s964_s18  }
  0x33   :  { %955 = dma.done.wait [#allocation3], 2048  }
  0x34   :  { %956 = vsyncadd [#allocation3], 4294965248 }
  0x35   :  { %957 = dma.done.wait [#allocation6], 4096  }
  0x36   :  { %958 = vsyncadd [#allocation6], 4294963200  ;;  %v966_v0 = vmov 0   ;;  %v87_v1 = vld [vmem:[%s1116_s1] sm:$0xff]  ;;  %v88_v3 = vld [vmem:[%s1116_s1 + $0x8] sm:$0xff]  ;;  %v71_v53 = vlaneseq  ;;  %vm102_vm0 = vcmask 64512  }
  0x37   :  { %866 = vset.pattern.permute.xlu1 %v966_v0  ;;  %865 = vset.pattern.permute.xlu0 %v966_v0  ;;  %v73_v2 = vld [vmem:[%s1115_s0] sm:$0xff]  ;;  %v74_v4 = vld [vmem:[%s1115_s0 + $0x8] sm:$0xff]  ;;  %v269_v8 = vld [vmem:[#allocation2 + $0x10] sm:$0xff]  ;;  %v967_v57 = vmov 0.0   ;;  %s968_s10 = smov [#allocation8]  }
  0x38   :  { %90 = vperm.xlu1 %866, %v87_v1   ;;  %76 = vperm.xlu0 %865, %v73_v2   ;;  %v1081_v5 = vld [vmem:[%s1118_s3] sm:$0xff]  ;;  %v268_v7 = vld [vmem:[#allocation2 + $0x8] sm:$0xff]  ;;  %v270_v10 = vld [vmem:[#allocation2 + $0x18] sm:$0xff]  ;;  %v72_v54 = vand.u32 127, %v71_v53  ;;  %s560_s11 = sshll.u32 %s968_s10, 4  ;;  %s561_s11 = int_to_ptr.vmem [resolvable:$true] %s560_s11 }
  0x39   :  { %642 = vmatprep.subr.mxu1 %v1081_v5  ;;  %v267_v6 = vld [vmem:[#allocation2] sm:$0xff]  ;;  %v793_v11 = vpack.c.bf16 %v270_v10, %v269_v8  ;;  %v272_v13 = vld [vmem:[#allocation2 + $0x28] sm:$0xff]  ;;  %v273_v15 = vld [vmem:[#allocation2 + $0x30] sm:$0xff]  ;;  %s933_s12 = scalar_lea.vmem %s561_s11, 256  ;;  %p938_p11 = scmp.lt.s32.totalorder %s561_s11, %s561_s11 }
  0x3a   :  { %643 = vmatpush3.msra.mxu1 %v1081_v5  ;;  %v789_v9 = vpack.c.bf16 %v268_v7, %v267_v6  ;;  %v271_v12 = vld [vmem:[#allocation2 + $0x20] sm:$0xff]  ;;  %v274_v16 = vld [vmem:[#allocation2 + $0x38] sm:$0xff]  ;;  %v276_v20 = vld [vmem:[#allocation2 + $0x48] sm:$0xff]  ;;  %p934_p10 = scmp.ne.s32.totalorder %s561_s11, %s933_s12  ;;  %p939_p12 = scmp.lt.s32.totalorder %s933_s12, %s933_s12 }
  0x3b   :  { %647 = vmatprep.subr.mxu1 %v1081_v5  ;;  %v797_v14 = vpack.c.bf16 %v272_v13, %v271_v12  ;;  %v265_v17 = vld [vmem:[%s1117_s2] sm:$0xff]  ;;  %v801_v18 = vpack.c.bf16 %v274_v16, %v273_v15  ;;  %v277_v22 = vld [vmem:[#allocation2 + $0x50] sm:$0xff]  ;;  %v278_v23 = vld [vmem:[#allocation2 + $0x58] sm:$0xff] }
  0x3c   :  { %93 = vperm.xlu1 %866, %v88_v3   ;;  %79 = vperm.xlu0 %865, %v74_v4   ;;  %v275_v19 = vld [vmem:[#allocation2 + $0x40] sm:$0xff]  ;;  %v809_v24 = vpack.c.bf16 %v278_v23, %v277_v22  ;;  %v280_v26 = vld [vmem:[#allocation2 + $0x68] sm:$0xff]  ;;  %v281_v28 = vld [vmem:[#allocation2 + $0x70] sm:$0xff]  ;;  %p940_p13 = por %p939_p12, %p938_p11 }
  0x3d   :  { %790 = vmatprep.subr.bf16.mxu0 %v789_v9  ;;  %719 = vmatprep.mubr.f32.mxu0 %v265_v17  ;;  %v805_v21 = vpack.c.bf16 %v276_v20, %v275_v19  ;;  %v279_v25 = vld [vmem:[#allocation2 + $0x60] sm:$0xff]  ;;  %v282_v29 = vld [vmem:[#allocation2 + $0x78] sm:$0xff]  ;;  %v450_v32 = vld [vmem:[#allocation7 + $0x8] sm:$0xff] }
  0x3e   :  { %792 = vmatpush3.bf16.msra.mxu0 %v789_v9  ;;  %v813_v27 = vpack.c.bf16 %v280_v26, %v279_v25  ;;  %v817_v30 = vpack.c.bf16 %v282_v29, %v281_v28  ;;  %v449_v31 = vld [vmem:[#allocation7] sm:$0xff]  ;;  %v451_v34 = vld [vmem:[#allocation7 + $0x10] sm:$0xff]  ;;  %v452_v35 = vld [vmem:[#allocation7 + $0x18] sm:$0xff]  ;;  %p941_p0 = pnand %p940_p13, %p934_p10 }
  0x3f   :  { %794 = vmatprep.subr.bf16.mxu0 %v793_v11  ;;  %v821_v33 = vpack.c.bf16 %v450_v32, %v449_v31  ;;  %v266_v36 = vld [vmem:[%s1117_s2 + $0x8] sm:$0xff]  ;;  %v825_v37 = vpack.c.bf16 %v452_v35, %v451_v34  ;;  %v453_v38 = vld [vmem:[#allocation7 + $0x20] sm:$0xff]  ;;  %v455_v41 = vld [vmem:[#allocation7 + $0x30] sm:$0xff] }
  0x40   :  { %v454_v39 = vld [vmem:[#allocation7 + $0x28] sm:$0xff]  ;;  %v456_v42 = vld [vmem:[#allocation7 + $0x38] sm:$0xff]  ;;  %v457_v44 = vld [vmem:[#allocation7 + $0x40] sm:$0xff] }
  0x41   :  { %v829_v40 = vpack.c.bf16 %v454_v39, %v453_v38  ;;  %v833_v43 = vpack.c.bf16 %v456_v42, %v455_v41  ;;  %v458_v45 = vld [vmem:[#allocation7 + $0x48] sm:$0xff]  ;;  %v459_v47 = vld [vmem:[#allocation7 + $0x50] sm:$0xff]  ;;  %v460_v48 = vld [vmem:[#allocation7 + $0x58] sm:$0xff] }
  0x42   :  { %796 = vmatpush3.bf16.msra.mxu0 %v793_v11  ;;  %v837_v46 = vpack.c.bf16 %v458_v45, %v457_v44  ;;  %v841_v49 = vpack.c.bf16 %v460_v48, %v459_v47  ;;  %v461_v50 = vld [vmem:[#allocation7 + $0x60] sm:$0xff]  ;;  %v462_v51 = vld [vmem:[#allocation7 + $0x68] sm:$0xff]  ;;  %v285_v2 = vld [vmem:[#allocation5 + $0x10] sm:$0xff] }
  0x43   :  { %798 = vmatprep.subr.bf16.mxu0 %v797_v14  ;;  %v845_v52 = vpack.c.bf16 %v462_v51, %v461_v50  ;;  %v283_v59 = vld [vmem:[#allocation5] sm:$0xff]  ;;  %v284_v60 = vld [vmem:[#allocation5 + $0x8] sm:$0xff]  ;;  %v286_v3 = vld [vmem:[#allocation5 + $0x18] sm:$0xff] }
  0x44   :  { %v757_v0 = vpack.c.bf16 %v284_v60, %v283_v59  ;;  %v761_v4 = vpack.c.bf16 %v286_v3, %v285_v2  ;;  %v287_v7 = vld [vmem:[#allocation5 + $0x20] sm:$0xff]  ;;  %v288_v8 = vld [vmem:[#allocation5 + $0x28] sm:$0xff]  ;;  %v289_v10 = vld [vmem:[#allocation5 + $0x30] sm:$0xff] }
  0x45   :  { %v765_v9 = vpack.c.bf16 %v288_v8, %v287_v7  ;;  %v290_v11 = vld [vmem:[#allocation5 + $0x38] sm:$0xff]  ;;  %v291_v13 = vld [vmem:[#allocation5 + $0x40] sm:$0xff]  ;;  %v293_v15 = vld [vmem:[#allocation5 + $0x50] sm:$0xff] }
  0x46   :  { %800 = vmatpush3.bf16.msra.mxu0 %v797_v14  ;;  %v769_v12 = vpack.c.bf16 %v290_v11, %v289_v10  ;;  %v292_v14 = vld [vmem:[#allocation5 + $0x48] sm:$0xff]  ;;  %v294_v16 = vld [vmem:[#allocation5 + $0x58] sm:$0xff]  ;;  %v581_v34 = vld [vmem:[%s1122_s7] ss:$0 sm:$0xff] }
  0x47   :  { %802 = vmatprep.subr.bf16.mxu0 %v801_v18  ;;  %v777_v17 = vpack.c.bf16 %v294_v16, %v293_v15  ;;  %v296_v19 = vld [vmem:[#allocation5 + $0x68] sm:$0xff]  ;;  %v298_v22 = vld [vmem:[#allocation5 + $0x78] sm:$0xff] }
  0x48   :  { %v464_v25 = vld [vmem:[#allocation7 + $0x78] sm:$0xff] }
  0x4a   :  { %804 = vmatpush3.bf16.msra.mxu0 %v801_v18  ;;  %v295_v18 = vld [vmem:[#allocation5 + $0x60] sm:$0xff] }
  0x4b   :  { %806 = vmatprep.subr.bf16.mxu0 %v805_v21  ;;  %v781_v20 = vpack.c.bf16 %v296_v19, %v295_v18 }
  0x4e   :  { %808 = vmatpush3.bf16.msra.mxu0 %v805_v21  ;;  %v297_v21 = vld [vmem:[#allocation5 + $0x70] sm:$0xff] }
  0x4f   :  { %810 = vmatprep.subr.bf16.mxu0 %v809_v24  ;;  %v785_v23 = vpack.c.bf16 %v298_v22, %v297_v21 }
  0x52   :  { %812 = vmatpush3.bf16.msra.mxu0 %v809_v24  ;;  %v463_v24 = vld [vmem:[#allocation7 + $0x70] sm:$0xff] }
  0x53   :  { %814 = vmatprep.subr.bf16.mxu0 %v813_v27  ;;  %v849_v26 = vpack.c.bf16 %v464_v25, %v463_v24 }
  0x56   :  { %816 = vmatpush3.bf16.msra.mxu0 %v813_v27 }
  0x57   :  { %818 = vmatprep.subr.bf16.mxu0 %v817_v30 }
  0x5a   :  { %820 = vmatpush3.bf16.msra.mxu0 %v817_v30 }
  0x5b   :  { %822 = vmatprep.subr.bf16.mxu0 %v821_v33 }
  0x5d   :  { %720 = vmatmul.mubr.f32.vlgmr.msra.gmra.mrb[0].mxu0 %v266_v36 }
  0x5e   :  { %824 = vmatpush3.bf16.msra.mxu0 %v821_v33 }
  0x5f   :  { %826 = vmatprep.subr.bf16.mxu0 %v825_v37 }
  0x62   :  { %828 = vmatpush3.bf16.msra.mxu0 %v825_v37 }
  0x63   :  { %830 = vmatprep.subr.bf16.mxu0 %v829_v40 }
  0x66   :  { %832 = vmatpush3.bf16.msra.mxu0 %v829_v40 }
  0x67   :  { %834 = vmatprep.subr.bf16.mxu0 %v833_v43 }
  0x6a   :  { %836 = vmatpush3.bf16.msra.mxu0 %v833_v43 }
  0x6b   :  { %838 = vmatprep.subr.bf16.mxu0 %v837_v46 }
  0x6e   :  { %840 = vmatpush3.bf16.msra.mxu0 %v837_v46 }
  0x6f   :  { %842 = vmatprep.subr.bf16.mxu0 %v841_v49 }
  0x72   :  { %844 = vmatpush3.bf16.msra.mxu0 %v841_v49 }
  0x73   :  { %846 = vmatprep.subr.bf16.mxu0 %v845_v52 }
  0x76   :  { %848 = vmatpush3.bf16.msra.mxu0 %v845_v52 }
  0x77   :  { %850 = vmatprep.subr.bf16.mxu0 %v849_v26 }
  0x7a   :  { %852 = vmatpush3.bf16.msra.mxu0 %v849_v26 }
  0xb7   :  { %v91_v55 = vpop.permute.xlu1 %90  ;;  %v77_v56 = vpop.permute.xlu0 %76 }
  0xb8   :  { %vm81_vm1 = vcmp.eq.s32.totalorder %v77_v56, %v72_v54  ;;  %vm95_vm2 = vcmp.eq.s32.totalorder %v91_v55, %v72_v54 }
  0xb9   :  { %v573_v58 = vsel %vm81_vm1, 1.0, %v967_v57  ;;  %v575_v63 = vsel %vm95_vm2, 1.0, %v967_v57 }
  0xba   :  { %644 = vmatprep.mubr.msk.f32.mxu1 %vm102_vm0, %v573_v58 }
  0xbb   :  { %v94_v61 = vpop.permute.xlu1 %93  ;;  %v80_v62 = vpop.permute.xlu0 %79 }
  0xbc   :  { %vm82_vm3 = vcmp.eq.s32.totalorder %v80_v62, %v72_v54  ;;  %vm96_vm4 = vcmp.eq.s32.totalorder %v94_v61, %v72_v54 }
  0xbd   :  { %v574_v1 = vsel %vm82_vm3, 1.0, %v967_v57  ;;  %v576_v6 = vsel %vm96_vm4, 1.0, %v967_v57 }
  0xbe   :  { %645 = vmatmul.mubr.msk.f32.vlgmr.msra.gmra.mrb[0].mxu1 %vm102_vm0, %v574_v1 }
  0xbf   :  { %648 = vmatpush3.msra.mxu1 %v1081_v5  ;;  %649 = vmatprep.mubr.msk.f32.mxu1 %vm102_vm0, %v575_v63  ;;  %v773_v5 = vpack.c.bf16 %v292_v14, %v291_v13 }
  0xc0   :  { %758 = vmatprep.subr.bf16.mxu1 %v757_v0 }
  0xc2   :  { %650 = vmatmul.mubr.msk.f32.vlgmr.msra.gmra.mrb[2].mxu1 %vm102_vm0, %v576_v6 }
  0xc3   :  { %760 = vmatpush3.bf16.msra.mxu1 %v757_v0 }
  0xc4   :  { %762 = vmatprep.subr.bf16.mxu1 %v761_v4 }
  0xc7   :  { %764 = vmatpush3.bf16.msra.mxu1 %v761_v4 }
  0xc8   :  { %766 = vmatprep.subr.bf16.mxu1 %v765_v9 }
  0xcb   :  { %768 = vmatpush3.bf16.msra.mxu1 %v765_v9 }
  0xcc   :  { %770 = vmatprep.subr.bf16.mxu1 %v769_v12 }
  0xcf   :  { %772 = vmatpush3.bf16.msra.mxu1 %v769_v12 }
  0xd0   :  { %774 = vmatprep.subr.bf16.mxu1 %v773_v5 }
  0xd3   :  { %776 = vmatpush3.bf16.msra.mxu1 %v773_v5 }
  0xd4   :  { %778 = vmatprep.subr.bf16.mxu1 %v777_v17 }
  0xd7   :  { %780 = vmatpush3.bf16.msra.mxu1 %v777_v17 }
  0xd8   :  { %782 = vmatprep.subr.bf16.mxu1 %v781_v20 }
  0xdb   :  { %784 = vmatpush3.bf16.msra.mxu1 %v781_v20 }
  0xdc   :  { %786 = vmatprep.subr.bf16.mxu1 %v785_v23 }
  0xdf   :  { %788 = vmatpush3.bf16.msra.mxu1 %v785_v23 }
 0x191   :  { %v646_v27 = vpop.f32.mrb[0].mxu1 }
 0x192   :  { %v175_v28 = vpop.f32.mrb[1].mxu1 }
 0x193   :  { %684 = vmatprep.mubr.f32.mxu1 %v175_v28 }
 0x194   :  { %685 = vmatmul.mubr.f32.vlgmr.msra.gmra.mrb[4].mxu1 %v646_v27 }
 0x195   :  { %v651_v29 = vpop.f32.mrb[2].mxu1 }
 0x196   :  { %v256_v30 = vpop.f32.mrb[3].mxu1 }
 0x197   :  { %754 = vmatprep.mubr.f32.mxu0 %v256_v30 }
 0x198   :  { %755 = vmatmul.mubr.f32.vlgmr.msra.gmra.mrb[0].mxu0 %v651_v29 }
 0x267   :  { %v686_v31 = vpop.f32.mrb[4].mxu1 }
 0x268   :  { %v365_v32 = vpop.f32.mrb[5].mxu1 }
 0x26b   :  { %v756_v33 = vpop.f32.mrb[0].mxu0 }
 0x26c   :  { %v853_v35 = vadd.f32 %v756_v33, %v686_v31  ;;  %v531_v36 = vpop.f32.mrb[1].mxu0 }
 0x26d   :  { %v854_v37 = vadd.f32 %v531_v36, %v365_v32 }
 0x26e   :  { %v550_v38 = vadd.f32 %v853_v35, %v581_v34 }
 0x26f   :  { %v549_v39 = vadd.f32 %v854_v37, %v581_v34 }
 0x270   :  { %v552_v40 = vmax.f32 %v550_v38, 0.0 }
 0x271   :  { %v551_v41 = vmax.f32 %v549_v39, 0.0 }
 0x272   :  { %554 = vst [vmem:[#allocation8 + $0x8] sm:$0xff] %v552_v40 }
 0x273   :  { %553 = vst [vmem:[#allocation8] sm:$0xff] %v551_v41 }
 0x274   :  { %944 = shalt.err (!%p941_p0)
}
 0x275   :  { %s945_s14 = scalar_lea.hbm %s1123_s8, 256 }
 0x276   :  { %p946_p1 = scmp.ne.s32.totalorder %s1123_s8, %s945_s14  ;;  %p949_p2 = scmp.lt.u32.totalorder %s945_s14, %s1123_s8 }
 0x278   :  { %p951_p3 = pnand %p949_p2, %p946_p1 }
 0x27a   :  { %954 = shalt.err (!%p951_p3)
}
 0x27b   :  { %566 = dma.vmem_to_hbm [thread:$0]  %s561_s11, 256, %s1123_s8, [#allocation4], %s963_s17, %s963_s17, %s964_s18  }
 0x27c   :  { %959 = dma.done.wait [#allocation4], 256  }
 0x27d   :  { %960 = vsyncadd [#allocation4], 4294967040 }
 0x27e   :  { %570 = vsyncpa [#allocation3], 1 }
 0x27f   :  { %571 = vsyncpa [#allocation6], 1 }
 0x280   :  { %572 = vsyncpa [#allocation4], 1 }

</bundles_post_ra>
